<compile_context>
chip_gen: v7x
topology: tpu7x:2x2x1
jax: 0.10.0
libtpu: 0.0.40
codegen_flags: <defaults>
</compile_context>

<pallas_src>
import functools

import jax
import jax.numpy as jnp
from jax.experimental import pallas as pl
from jax.experimental.pallas import tpu as pltpu


_VMEM_LIMIT_BYTES = 32 * 1024 * 1024     # safe scoped-VMEM budget on v5e/v6e/v7x
_RESIDENT_MAX_BYTES = 6 * 1024 * 1024    # single-block fast-path threshold
_TILE_ROW_CANDIDATES = (1024, 512, 256, 128, 64, 32, 16, 8)
_LANE_WIDTH_CANDIDATES = (512, 256, 128)


# --------------------------------------------------------------------------
# Kernels
# --------------------------------------------------------------------------
def _resident_kernel(x_ref, o_ref, *, inv_n):
    """Whole tensor resident in VMEM: global mean + subtract in one shot."""
    x = x_ref[...].astype(jnp.float32)
    mean = jnp.sum(x) * inv_n                      # multiply by 1/N, not divide
    o_ref[...] = (x - mean).astype(o_ref.dtype)


def _mean_kernel(x_ref, mean_ref, *, inv_n):
    """Pass 1: accumulate a global f32 sum over row tiles, finalize to mean."""
    @pl.when(pl.program_id(0) == 0)
    def _init():
        mean_ref[...] = jnp.zeros_like(mean_ref)

    mean_ref[...] += jnp.sum(x_ref[...].astype(jnp.float32))

    @pl.when(pl.program_id(0) == pl.num_programs(0) - 1)
    def _finalize():
        mean_ref[...] = mean_ref[...] * inv_n


def _subtract_kernel(mean_ref, x_ref, o_ref):
    """Pass 2: tiled elementwise subtract of the (SMEM) scalar mean."""
    mean = mean_ref[0, 0]
    o_ref[...] = (x_ref[...].astype(jnp.float32) - mean).astype(o_ref.dtype)


# --------------------------------------------------------------------------
# Wrappers
# --------------------------------------------------------------------------
def _lane_dense_2d(x):
    """Flatten to 2-D with a 128-multiple last dim when the size allows it."""
    n = x.size
    for w in _LANE_WIDTH_CANDIDATES:
        if n % w == 0:
            return x.reshape(n // w, w)
    # Fallback: keep the original last axis on lanes (may be narrow/masked).
    if x.ndim >= 2:
        return x.reshape(-1, x.shape[-1])
    return x.reshape(1, -1)


def _centered_resident(x2d, inv_n, out_dtype):
    return pl.pallas_call(
        functools.partial(_resident_kernel, inv_n=inv_n),
        out_shape=jax.ShapeDtypeStruct(x2d.shape, out_dtype),
        grid=(1,),
        in_specs=[pl.BlockSpec(x2d.shape, lambda i: (0, 0))],
        out_specs=pl.BlockSpec(x2d.shape, lambda i: (0, 0)),
        compiler_params=pltpu.CompilerParams(
            dimension_semantics=("arbitrary",),
            vmem_limit_bytes=_VMEM_LIMIT_BYTES,
        ),
    )(x2d)


def _centered_tiled(x2d, inv_n, out_dtype):
    rows, width = x2d.shape

    tile_r = None
    for cand in _TILE_ROW_CANDIDATES:
        if rows % cand == 0:
            tile_r = cand
            break

    pad_rows = 0
    if tile_r is None:
        # Pad with zeros: zeros do not change the sum, and the mean uses the
        # true element count (inv_n); padded output rows are sliced off below.
        tile_r = 256
        pad_rows = (-rows) % tile_r
        x2d = jnp.pad(x2d, ((0, pad_rows), (0, 0)))

    padded_rows = rows + pad_rows
    num_tiles = padded_rows // tile_r

    # Pass 1: global mean via a resident (1,1) f32 accumulator across the grid.
    mean_arr = pl.pallas_call(
        functools.partial(_mean_kernel, inv_n=inv_n),
        out_shape=jax.ShapeDtypeStruct((1, 1), jnp.float32),
        grid=(num_tiles,),
        in_specs=[pl.BlockSpec((tile_r, width), lambda i: (i, 0))],
        out_specs=pl.BlockSpec((1, 1), lambda i: (0, 0)),
        compiler_params=pltpu.CompilerParams(
            dimension_semantics=("arbitrary",),
            vmem_limit_bytes=_VMEM_LIMIT_BYTES,
        ),
    )(x2d)

    # Pass 2: tiled subtract; mean rides in SMEM, row-tile axis is "parallel"
    # so it shards across both TensorCores on v7x (free on v5e/v6e).
    out2d = pl.pallas_call(
        _subtract_kernel,
        out_shape=jax.ShapeDtypeStruct((padded_rows, width), out_dtype),
        grid=(num_tiles,),
        in_specs=[
            pl.BlockSpec(memory_space=pltpu.MemorySpace.SMEM),
            pl.BlockSpec((tile_r, width), lambda i: (i, 0)),
        ],
        out_specs=pl.BlockSpec((tile_r, width), lambda i: (i, 0)),
        compiler_params=pltpu.CompilerParams(
            dimension_semantics=("parallel",),
            vmem_limit_bytes=_VMEM_LIMIT_BYTES,
        ),
    )(mean_arr, x2d)

    if pad_rows:
        out2d = out2d[:rows]
    return out2d


def centered_layer(x):
    """X - X.mean() (global mean), same semantics as the PyTorch module."""
    orig_shape = x.shape
    n = x.size
    inv_n = 1.0 / float(n)

    x2d = _lane_dense_2d(x)
    nbytes = n * x.dtype.itemsize

    if nbytes <= _RESIDENT_MAX_BYTES:
        out2d = _centered_resident(x2d, inv_n, x.dtype)
    else:
        out2d = _centered_tiled(x2d, inv_n, x.dtype)

    return out2d.reshape(orig_shape)


if __name__ == "__main__":
    key = jax.random.PRNGKey(0)
    # Small NCHW-style input (batch=2, channels=4, spatial=16x16).
    x = jax.random.normal(key, (2, 4, 16, 16), dtype=jnp.float32)

    out = jax.block_until_ready(centered_layer(x))

    # Reference check in plain JAX.
    ref = x - jnp.mean(x)
    assert out.shape == x.shape
    assert out.dtype == x.dtype
    assert jnp.allclose(out, ref, atol=1e-5, rtol=1e-5)
    assert abs(float(jnp.mean(out))) < 1e-5

    # Also exercise the tiled two-pass path (multiple row tiles) directly.
    x_big = jax.random.normal(jax.random.PRNGKey(1), (2048, 512),
                              dtype=jnp.float32)
    out_big = jax.block_until_ready(
        _centered_tiled(x_big, 1.0 / float(x_big.size), x_big.dtype))
    ref_big = x_big - jnp.mean(x_big)
    assert jnp.allclose(out_big, ref_big, atol=1e-4, rtol=1e-5)

    print("KERNEL_OK")
</pallas_src>

<mosaic_0001>
module attributes {stable_mosaic.version = 11 : i64} {
  func.func @_resident_kernel(%arg0: i32, %arg1: memref<4x512xf32, #tpu.memory_space<vmem>>, %arg2: memref<4x512xf32, #tpu.memory_space<vmem>>) attributes {dimension_semantics = [#tpu.dimension_semantics<arbitrary>], iteration_bounds = array<i64: 1>, scalar_prefetch = 0 : i64, scratch_operands = 0 : i64, tpu.core_type = #tpu.core_type<tc>, window_params = [{pipeline_mode = #tpu.pipeline_mode<synchronous>, transform_indices = @transform_0, window_bounds = array<i64: 4, 512>}, {pipeline_mode = #tpu.pipeline_mode<synchronous>, transform_indices = @transform_1, window_bounds = array<i64: 4, 512>}]} {
    %c0 = arith.constant 0 : index
    %c0_0 = arith.constant 0 : index
    %0 = vector.load %arg1[%c0, %c0_0] : memref<4x512xf32, #tpu.memory_space<vmem>>, vector<4x512xf32>
    %1 = vector.shape_cast %0 : vector<4x512xf32> to vector<1x4x512xf32>
    %cst = arith.constant dense<0.000000e+00> : vector<1xf32>
    %2 = vector.multi_reduction <add>, %1, %cst [1, 2] : vector<1x4x512xf32> to vector<1xf32>
    %3 = vector.shape_cast %2 : vector<1xf32> to vector<1x1x1xf32>
    %4 = vector.extract %3[0, 0, 0] : f32 from vector<1x1x1xf32>
    %cst_1 = arith.constant 4.8828125E-4 : f32
    %5 = arith.mulf %4, %cst_1 : f32
    %6 = vector.broadcast %5 : f32 to vector<4x512xf32>
    %7 = arith.subf %0, %6 : vector<4x512xf32>
    %c0_2 = arith.constant 0 : index
    %c0_3 = arith.constant 0 : index
    %8 = vector.load %arg2[%c0_2, %c0_3] : memref<4x512xf32, #tpu.memory_space<vmem>>, vector<4x512xf32>
    tpu.vector_store %arg2[%c0_2, %c0_3], %7 {strides = array<i32>} : memref<4x512xf32, #tpu.memory_space<vmem>>, vector<4x512xf32>,
    return
  }
  func.func @transform_0(%arg0: i32) -> (i32, i32) {
    %c0_i32 = arith.constant 0 : i32
    %c0_i32_0 = arith.constant 0 : i32
    %c0_i32_1 = arith.constant 0 : i32
    return %c0_i32, %c0_i32_0 : i32, i32
  }
  func.func @transform_1(%arg0: i32) -> (i32, i32) {
    %c0_i32 = arith.constant 0 : i32
    %c0_i32_0 = arith.constant 0 : i32
    %c0_i32_1 = arith.constant 0 : i32
    return %c0_i32, %c0_i32_0 : i32, i32
  }
}

</mosaic_0001>

<bundles_post_ra>
// kernel: tpu_custom_call.1
= control target key start
LH: loop header
LB: loop body
LE: loop exit
PB: predicated region body
PF: predicated region fallthrough
CT: control target
= control target key end

     0   :  { %6 = vsyncpa [#allocation3], 0  ;;  %s157_s0 = inlined_call_operand.hbm [shape: f32[4,512], index: 0, kind: input, shape index: {}]   ;;  %s158_s1 = inlined_call_operand.hbm [shape: f32[4,512], index: 1, kind: output, shape index: {}]  }
   0x1   :  { %7 = vsyncpa [#allocation4], 0  ;;  %s121_s6 = smov [#allocation2]   ;;  %s73_s10 = scalar_lea.hbm %s157_s0, 256 }
   0x2   :  { %s14_s7 = sshll.u32 %s121_s6, 4  ;;  %p74_p0 = scmp.ne.s32.totalorder %s157_s0, %s73_s10  ;;  %s15_s7 = int_to_ptr.vmem [resolvable:$true] %s14_s7 }
   0x3   :  { %p77_p1 = scmp.lt.u32.totalorder %s73_s10, %s157_s0 }
   0x5   :  { %p79_p2 = pnand %p77_p1, %p74_p0 }
   0x7   :  { %82 = shalt.err (!%p79_p2)
}
   0x8   :  { %s83_s15 = scalar_lea.vmem %s15_s7, 256  ;;  %p88_p4 = scmp.lt.s32.totalorder %s15_s7, %s15_s7 }
   0x9   :  { %p84_p3 = scmp.ne.s32.totalorder %s15_s7, %s83_s15  ;;  %p89_p5 = scmp.lt.s32.totalorder %s83_s15, %s83_s15 }
   0xb   :  { %p90_p6 = por %p89_p5, %p88_p4 }
   0xd   :  { %p91_p7 = pnand %p90_p6, %p84_p3 }
   0xf   :  { %94 = shalt.err (!%p91_p7)
}
  0x10   :  { %17 = dma.hbm_to_vmem [thread:$0]  %s157_s0, 256, %s15_s7, [#allocation3]  }
  0x11   :  { %117 = dma.done.wait [#allocation3], 256  }
  0x12   :  { %118 = vsyncadd [#allocation3], 4294967040  ;;  %vm29_vm0 = vcmask 1043456   ;;  %v21_v0 = vld [vmem:[#allocation2] sm:$0xff]  ;;  %v22_v1 = vld [vmem:[#allocation2 + $0x8] sm:$0xff]  ;;  %s122_s19 = smov [#allocation5]  }
  0x13   :  { %v25_v2 = vcombine.high %v21_v0, %v21_v0  ;;  %v26_v3 = vcombine.high %v22_v1, %v22_v1  ;;  %v30_v4 = vsel %vm29_vm0, %v21_v0, 0.0  ;;  %v33_v6 = vsel %vm29_vm0, %v22_v1, 0.0  ;;  %s58_s20 = sshll.u32 %s122_s19, 4  ;;  %s59_s20 = int_to_ptr.vmem [resolvable:$true] %s58_s20 }
  0x14   :  { %s95_s21 = scalar_lea.vmem %s59_s20, 256  ;;  %p100_p9 = scmp.lt.s32.totalorder %s59_s20, %s59_s20 }
  0x15   :  { %v31_v5 = vsel %vm29_vm0, %v25_v2, 0.0  ;;  %v35_v8 = vsel %vm29_vm0, %v26_v3, 0.0  ;;  %p96_p8 = scmp.ne.s32.totalorder %s59_s20, %s95_s21  ;;  %p101_p10 = scmp.lt.s32.totalorder %s95_s21, %s95_s21 }
  0x16   :  { %v32_v7 = vadd.f32 %v31_v5, %v30_v4 }
  0x17   :  { %p102_p11 = por %p101_p10, %p100_p9 }
  0x18   :  { %v34_v9 = vadd.f32 %v33_v6, %v32_v7 }
  0x19   :  { %p103_p12 = pnand %p102_p11, %p96_p8 }
  0x1a   :  { %v36_v10 = vadd.f32 %v35_v8, %v34_v9 }
  0x1c   :  { %37 = vadd.xlane.f32.xlu0 %v36_v10 }
  0xa9   :  { %v38_v11 = vpop.xlane.xlu0 %37 }
  0xaa   :  { %v39_v12 = vrot.slane %v38_v11, 4 }
  0xac   :  { %v40_v13 = vadd.f32 %v39_v12, %v38_v11 }
  0xae   :  { %v41_v14 = vrot.slane %v40_v13, 2 }
  0xb0   :  { %v42_v15 = vadd.f32 %v41_v14, %v40_v13 }
  0xb2   :  { %v43_v16 = vrot.slane %v42_v15, 1 }
  0xb4   :  { %v44_v17 = vadd.f32 %v43_v16, %v42_v15 }
  0xb6   :  { %67 = vpush %v44_v17 }
  0xe7   :  { %s68_s0 = spop %67 }
  0xe8   :  { %s46_s18 = smul.f32 0.00048828125, %s68_s0 }
  0xea   :  { %v47_v18 = vstv %s46_s18 }
  0xeb   :  { %v48_v19 = vsub.f32 %v21_v0, %v47_v18  ;;  %v49_v20 = vsub.f32 %v22_v1, %v47_v18 }
  0xed   :  { %50 = vst [vmem:[#allocation5] sm:$0xff] %v48_v19  ;;  %51 = vst [vmem:[#allocation5 + $0x8] sm:$0xff] %v49_v20 }
  0xee   :  { %106 = shalt.err (!%p103_p12)
}
  0xef   :  { %s107_s24 = scalar_lea.hbm %s158_s1, 256 }
  0xf0   :  { %p108_p13 = scmp.ne.s32.totalorder %s158_s1, %s107_s24  ;;  %p111_p0 = scmp.lt.u32.totalorder %s107_s24, %s158_s1 }
  0xf2   :  { %p113_p1 = pnand %p111_p0, %p108_p13 }
  0xf4   :  { %116 = shalt.err (!%p113_p1)
}
  0xf5   :  { %61 = dma.vmem_to_hbm [thread:$0]  %s59_s20, 256, %s158_s1, [#allocation4]  }
  0xf6   :  { %119 = dma.done.wait [#allocation4], 256  }
  0xf7   :  { %120 = vsyncadd [#allocation4], 4294967040 }
  0xf8   :  { %65 = vsyncpa [#allocation3], 1 }
  0xf9   :  { %66 = vsyncpa [#allocation4], 1 }

</bundles_post_ra>
